<compile_context>
chip_gen: v6e
topology: v6e:2x2x1
jax: 0.10.0
libtpu: 0.0.40
codegen_flags: <defaults>
</compile_context>

<pallas_src>
import jax
import jax.numpy as jnp
from jax.experimental import pallas as pl
from jax.experimental.pallas import tpu as pltpu


_LANE = 128
_SMALL_BATCH_THRESHOLD = 1024  # below this, plain XLA beats a kernel launch


def _round_up(n, m):
    return ((n + m - 1) // m) * m


def _block_diag_weight_t(mx):
    """Fold the two (4,3) weight blocks into one (6, 8) matrix W so that
    W @ x.T == cat([x[:, :4] @ mx[:4, :], x[:, 4:] @ mx[4:, :]], 1).T."""
    w = jnp.zeros((6, 8), dtype=mx.dtype)
    w = w.at[:3, :4].set(mx[:4, :].T)
    w = w.at[3:, 4:].set(mx[4:, :].T)
    return w


def _sensor_kernel(w_ref, xt_ref, ot_ref):
    # Single matmul: (6, 8) @ (8, TB) -> (6, TB).  Batch lives on the lane
    # axis -> lane-dense compute and unmasked full-width stores.
    ot_ref[...] = jnp.dot(
        w_ref[...], xt_ref[...], preferred_element_type=jnp.float32
    ).astype(ot_ref.dtype)


def _sensor_pallas(x, mx, *, tile_b=8192):
    B = x.shape[0]
    dtype = x.dtype

    tb = min(tile_b, _round_up(max(B, 1), _LANE))  # lane-axis tile (multiple of 128)
    b_pad = _round_up(B, tb)

    w = _block_diag_weight_t(mx).astype(dtype)                     # (6, 8)
    xt = jnp.zeros((8, b_pad), dtype=dtype).at[:, :B].set(x.T)     # (8, B_pad)

    out_t = pl.pallas_call(
        _sensor_kernel,
        out_shape=jax.ShapeDtypeStruct((6, b_pad), dtype),
        grid=(b_pad // tb,),
        in_specs=[
            pl.BlockSpec((6, 8), lambda i: (0, 0)),    # weight stays resident in VMEM
            pl.BlockSpec((8, tb), lambda i: (0, i)),   # x.T batch tile
        ],
        out_specs=pl.BlockSpec((6, tb), lambda i: (0, i)),
        compiler_params=pltpu.CompilerParams(
            dimension_semantics=("parallel",),
        ),
    )(w, xt)

    return out_t[:, :B].T  # back to the public (B, 6) interface


def sensor_model_forward(x, mx, *, tile_b=8192, force_pallas=False):
    """Equivalent of SensorModel.forward(x) with parameter mx (bias unused)."""
    B = x.shape[0]
    if not force_pallas and B < _SMALL_BATCH_THRESHOLD:
        # Kernel launch + DMA setup dwarfs the ~100 flops/row; let XLA fuse it.
        return jnp.concatenate([x[:, :4] @ mx[:4, :], x[:, 4:] @ mx[4:, :]], axis=1)
    return _sensor_pallas(x, mx, tile_b=tile_b)


if __name__ == "__main__":
    key = jax.random.PRNGKey(0)
    k_bias, k_mx, k_x = jax.random.split(key, 3)

    # Parameters matching the torch module's shapes.
    bias = jax.random.normal(k_bias, (8,), dtype=jnp.float32)  # unused in forward
    mx = jax.random.normal(k_mx, (8, 3), dtype=jnp.float32)

    def ref_fn(x):
        return jnp.concatenate([x[:, :4] @ mx[:4, :], x[:, 4:] @ mx[4:, :]], axis=1)

    # Small-shape check (B=2): force the Pallas path so the kernel runs.
    x_small = jax.random.normal(k_x, (2, 8), dtype=jnp.float32)
    out_small = jax.block_until_ready(
        sensor_model_forward(x_small, mx, force_pallas=True))
    assert out_small.shape == (2, 6)
    assert jnp.allclose(out_small, ref_fn(x_small), atol=1e-5, rtol=1e-5)

    # Multi-tile check: B=2048 with a 512-lane tile -> 4 grid steps.
    x_big = jax.random.normal(jax.random.PRNGKey(1), (2048, 8), dtype=jnp.float32)
    out_big = jax.block_until_ready(
        sensor_model_forward(x_big, mx, tile_b=512, force_pallas=True))
    assert out_big.shape == (2048, 6)
    assert jnp.allclose(out_big, ref_fn(x_big), atol=1e-4, rtol=1e-4)

    # Default dispatch at tiny batch uses plain XLA (kernel not worth a launch).
    out_dispatch = jax.block_until_ready(sensor_model_forward(x_small, mx))
    assert jnp.allclose(out_dispatch, ref_fn(x_small), atol=1e-5, rtol=1e-5)

    print("KERNEL_OK")
</pallas_src>

<mosaic_0001>
module attributes {stable_mosaic.version = 11 : i64} {
  func.func @_sensor_kernel(%arg0: i32, %arg1: memref<6x8xf32, #tpu.memory_space<vmem>>, %arg2: memref<8x128xf32, #tpu.memory_space<vmem>>, %arg3: memref<6x128xf32, #tpu.memory_space<vmem>>) attributes {dimension_semantics = [#tpu.dimension_semantics<parallel>], iteration_bounds = array<i64: 1>, scalar_prefetch = 0 : i64, scratch_operands = 0 : i64, tpu.core_type = #tpu.core_type<tc>, window_params = [{pipeline_mode = #tpu.pipeline_mode<synchronous>, transform_indices = @transform_0, window_bounds = array<i64: 6, 8>}, {transform_indices = @transform_1, window_bounds = array<i64: 8, 128>}, {transform_indices = @transform_2, window_bounds = array<i64: 6, 128>}]} {
    %c0 = arith.constant 0 : index
    %c0_0 = arith.constant 0 : index
    %0 = vector.load %arg1[%c0, %c0_0] : memref<6x8xf32, #tpu.memory_space<vmem>>, vector<6x8xf32>
    %c0_1 = arith.constant 0 : index
    %c0_2 = arith.constant 0 : index
    %1 = vector.load %arg2[%c0_1, %c0_2] : memref<8x128xf32, #tpu.memory_space<vmem>>, vector<8x128xf32>
    %cst = arith.constant dense<0.000000e+00> : vector<6x128xf32>
    %2 = tpu.matmul %0, %1, %cst {dimension_numbers = #tpu.dot_dimension_numbers<[1], [0], [0], [1], [0, 0, 1, 1], [], []>} : vector<6x8xf32>, vector<8x128xf32>, vector<6x128xf32> -> vector<6x128xf32>
    %c0_3 = arith.constant 0 : index
    %c0_4 = arith.constant 0 : index
    %3 = vector.load %arg3[%c0_3, %c0_4] : memref<6x128xf32, #tpu.memory_space<vmem>>, vector<6x128xf32>
    tpu.vector_store %arg3[%c0_3, %c0_4], %2 {strides = array<i32>} : memref<6x128xf32, #tpu.memory_space<vmem>>, vector<6x128xf32>,
    return
  }
  func.func @transform_0(%arg0: i32) -> (i32, i32) {
    %c0_i32 = arith.constant 0 : i32
    %c0_i32_0 = arith.constant 0 : i32
    %c0_i32_1 = arith.constant 0 : i32
    return %c0_i32, %c0_i32_0 : i32, i32
  }
  func.func @transform_1(%arg0: i32) -> (i32, i32) {
    %c0_i32 = arith.constant 0 : i32
    %c0_i32_0 = arith.constant 0 : i32
    return %c0_i32, %arg0 : i32, i32
  }
  func.func @transform_2(%arg0: i32) -> (i32, i32) {
    %c0_i32 = arith.constant 0 : i32
    %c0_i32_0 = arith.constant 0 : i32
    return %c0_i32, %arg0 : i32, i32
  }
}

</mosaic_0001>

<bundles_post_ra>
// kernel: tpu_custom_call.1
= control target key start
LH: loop header
LB: loop body
LE: loop exit
PB: predicated region body
PF: predicated region fallthrough
CT: control target
= control target key end

     0   :  { %7 = vsyncpa [#allocation3], 0  ;;  %s237_s0 = inlined_call_operand.hbm [shape: f32[6,8], index: 0, kind: input, shape index: {}]   ;;  %s238_s1 = inlined_call_operand.hbm [shape: f32[8,128], index: 1, kind: input, shape index: {}]   ;;  %s239_s2 = inlined_call_operand.hbm [shape: f32[6,128], index: 2, kind: output, shape index: {}]  }
   0x1   :  { %8 = vsyncpa [#allocation6], 0 }
   0x2   :  { %9 = vsyncpa [#allocation4], 0  ;;  %s208_s9 = smov [#allocation2]   ;;  %s209_s11 = smov [#allocation5]  }
   0x3   :  { %s16_s10 = sshll.u32 %s208_s9, 4  ;;  %s26_s12 = sshll.u32 %s209_s11, 4  ;;  %s17_s10 = int_to_ptr.vmem [resolvable:$true] %s16_s10  ;;  %s27_s12 = int_to_ptr.vmem [resolvable:$true] %s26_s12 }
   0x4   :  { %s150_s13 = scalar_lea.vmem %s17_s10, 128  ;;  %p155_p1 = scmp.lt.s32.totalorder %s17_s10, %s17_s10 }
   0x5   :  { %p151_p0 = scmp.ne.s32.totalorder %s17_s10, %s150_s13  ;;  %p156_p2 = scmp.lt.s32.totalorder %s150_s13, %s150_s13 }
   0x7   :  { %p157_p3 = por %p156_p2, %p155_p1 }
   0x9   :  { %p158_p4 = pnand %p157_p3, %p151_p0 }
   0xb   :  { %161 = shalt.err (!%p158_p4)
}
   0xc   :  { %19 = dma.hbm_to_vmem [thread:$0]  %s237_s0, 128, %s17_s10, [#allocation3]  }
   0xd   :  { %s170_s16 = scalar_lea.vmem %s27_s12, 128  ;;  %p175_p6 = scmp.lt.s32.totalorder %s27_s12, %s27_s12 }
   0xe   :  { %p171_p5 = scmp.ne.s32.totalorder %s27_s12, %s170_s16  ;;  %p176_p7 = scmp.lt.s32.totalorder %s170_s16, %s170_s16 }
  0x10   :  { %p177_p8 = por %p176_p7, %p175_p6 }
  0x12   :  { %p178_p9 = pnand %p177_p8, %p171_p5 }
  0x14   :  { %181 = shalt.err (!%p178_p9)
}
  0x15   :  { %29 = dma.hbm_to_vmem [thread:$0]  %s238_s1, 128, %s27_s12, [#allocation6]  }
  0x16   :  { %202 = dma.done.wait [#allocation3], 128  }
  0x17   :  { %203 = vsyncadd [#allocation3], 4294967168 }
  0x18   :  { %204 = dma.done.wait [#allocation6], 128  }
  0x19   :  { %205 = vsyncadd [#allocation6], 4294967168  ;;  %v210_v0 = vmov 0.0   ;;  %vm211_vm0 = vmmov 0   ;;  %vm38_vm1 = vcmask 64512   ;;  %v37_v1 = vld [vmem:[#allocation5] sm:$0xff] }
  0x1a   :  { %132 = vmatprep.subr.mxu0 %v210_v0  ;;  %134 = vmatprep.mubr.msk.f32.mxu0 %vm211_vm0, %v210_v0  ;;  %v36_v2 = vld [vmem:[#allocation2] sm:$0x3f]  ;;  %s212_s0 = smov [#allocation7]  }
  0x1b   :  { %133 = vmatpush3.msra.mxu0 %v37_v1  ;;  %s119_s19 = sshll.u32 %s212_s0, 4  ;;  %s120_s19 = int_to_ptr.vmem [resolvable:$true] %s119_s19 }
  0x1c   :  { %135 = vmatmul.mubr.msk.f32.vlgmr.msra.gmra.mxu0 %vm38_vm1, %v36_v2  ;;  %s182_s1 = scalar_lea.vmem %s120_s19, 128  ;;  %p187_p11 = scmp.lt.s32.totalorder %s120_s19, %s120_s19 }
  0x1d   :  { %p183_p10 = scmp.ne.s32.totalorder %s120_s19, %s182_s1  ;;  %p188_p12 = scmp.lt.s32.totalorder %s182_s1, %s182_s1 }
  0x1f   :  { %p189_p13 = por %p188_p12, %p187_p11 }
  0x21   :  { %p190_p0 = pnand %p189_p13, %p183_p10 }
  0xdc   :  { %v108_v3 = vpop.f32.mrf.mxu0 }
  0xdd   :  { %112 = vst [vmem:[#allocation7] sm:$0x3f] %v108_v3 }
  0xde   :  { %v136_v4 = vpop.f32.mrf.mxu0 }
  0xdf   :  { %193 = shalt.err (!%p190_p0)
}
  0xe0   :  { %122 = dma.vmem_to_hbm [thread:$0]  %s120_s19, 128, %s239_s2, [#allocation4]  }
  0xe1   :  { %206 = dma.done.wait [#allocation4], 128  }
  0xe2   :  { %207 = vsyncadd [#allocation4], 4294967168 }
  0xe3   :  { %126 = vsyncpa [#allocation3], 1 }
  0xe4   :  { %127 = vsyncpa [#allocation6], 1 }
  0xe5   :  { %128 = vsyncpa [#allocation4], 1 }

</bundles_post_ra>
